<compile_context>
chip_gen: v5e
topology: v5e:2x2
jax: 0.10.0
libtpu: 0.0.40
codegen_flags: <defaults>
</compile_context>

<pallas_src>
import jax
import jax.numpy as jnp
from jax import lax
from jax.experimental import pallas as pl
from jax.experimental.pallas import tpu as pltpu

BN_EPS = 1e-5


def conv1x1_bn_sigmoid_kernel(x_ref, w_ref, b_ref, g_ref, beta_ref, o_ref):
    # x_ref    : (N, C_in, HW)    VMEM  input (free reshape of NCHW)
    # w_ref    : (C_out*C_in,)    SMEM  1x1 conv weights, row-major (c_out, c_in)
    # b_ref    : (C_out,)         SMEM  conv bias
    # g_ref    : (C_out,)         SMEM  BN gamma (tiled to C_out)
    # beta_ref : (C_out,)         SMEM  BN beta  (tiled to C_out)
    # o_ref    : (N, C_out, HW)   VMEM  sigmoid(batchnorm(conv(x)))
    x = x_ref[...]                            # single VMEM load
    n, c_in, hw = x.shape
    c_out = o_ref.shape[1]
    inv_m = 1.0 / (n * hw)                    # BN reduces over batch + spatial

    for c in range(c_out):                    # static, fully unrolled (C_out=4)
        # 1x1 conv for channel c: scalar*vector FMAs on the VPU (no MXU).
        y = w_ref[c * c_in] * x[:, 0, :]
        for ci in range(1, c_in):
            y = y + w_ref[c * c_in + ci] * x[:, ci, :]
        y = y + b_ref[c]                      # (N, HW)

        # Single sweep for batch-norm stats -> one per-channel scale/shift.
        s = jnp.sum(y, keepdims=True)         # (1, 1)
        ss = jnp.sum(y * y, keepdims=True)    # (1, 1)
        mean = s * inv_m
        var = jnp.maximum(ss * inv_m - mean * mean, 0.0)
        scale = g_ref[c] * lax.rsqrt(var + BN_EPS)
        shift = beta_ref[c] - mean * scale

        # One fused normalize + activation pass.
        # sigmoid(z) = 0.5*tanh(z/2) + 0.5 : tanh runs on the EUP slot,
        # no VPU true-divide in the hot path.
        z = y * scale + shift
        o_ref[:, c, :] = 0.5 * jnp.tanh(0.5 * z) + 0.5


def model_forward(x_nchw, conv2_w, conv2_b, bn_gamma, bn_beta):
    """v4 = sigmoid(batchnorm(conv2(x)))  — x in NCHW, returns NCHW."""
    N, C_in, H, W = x_nchw.shape
    C_out = conv2_w.shape[0]
    HW = H * W

    # Free (no-copy) reshape: keep NCHW memory order — no wrapper transposes.
    x3 = x_nchw.reshape(N, C_in, HW).astype(jnp.float32)

    # Tiny parameters live in SMEM as scalars (1-D to avoid 2-D SMEM padding).
    w = conv2_w.reshape(C_out * C_in).astype(jnp.float32)
    b = conv2_b.astype(jnp.float32)

    # TODO(synk): the original module's BatchNorm2d(2) cannot be applied to 4
    # channels in PyTorch; we tile its (2,) affine params to 4 channels
    # (ones/zeros under default init, so numerics are unchanged).
    rep = C_out // bn_gamma.shape[0]
    g = jnp.tile(bn_gamma, rep).astype(jnp.float32)
    be = jnp.tile(bn_beta, rep).astype(jnp.float32)

    # TODO(synk): v1 = conv1(bn(x)) and v2 = sigmoid(v1) are dead code in the
    # original forward (never returned), so they are not computed here.

    # Grid-less single block: everything fits comfortably in VMEM at these
    # sizes and the call is launch-overhead bound.
    # TODO(synk): if N*H*W scales up (v7x: 32 MiB scoped-VMEM default), tile HW
    # with a grid and restructure BN into a two-pass sum/sumsq accumulator.
    out3 = pl.pallas_call(
        conv1x1_bn_sigmoid_kernel,
        out_shape=jax.ShapeDtypeStruct((N, C_out, HW), jnp.float32),
        in_specs=[
            pl.BlockSpec((N, C_in, HW), lambda: (0, 0, 0)),
            pl.BlockSpec(memory_space=pltpu.MemorySpace.SMEM),
            pl.BlockSpec(memory_space=pltpu.MemorySpace.SMEM),
            pl.BlockSpec(memory_space=pltpu.MemorySpace.SMEM),
            pl.BlockSpec(memory_space=pltpu.MemorySpace.SMEM),
        ],
        out_specs=pl.BlockSpec((N, C_out, HW), lambda: (0, 0, 0)),
    )(x3, w, b, g, be)

    # Free reshape back to NCHW — no output transpose.
    return out3.reshape(N, C_out, H, W)


if __name__ == "__main__":
    key = jax.random.PRNGKey(0)
    k_x, k_w, k_b = jax.random.split(key, 3)

    # Small shapes consistent with the module (original x1 was (1, 2, 128, 128)).
    N, C_in, H, W, C_out = 2, 2, 16, 16, 4

    x = jax.random.normal(k_x, (N, C_in, H, W), dtype=jnp.float32)

    # Deterministic parameter init (synthetic, not a checkpoint load).
    conv2_w = 0.5 * jax.random.normal(k_w, (C_out, C_in, 1, 1), dtype=jnp.float32)
    conv2_b = 0.1 * jax.random.normal(k_b, (C_out,), dtype=jnp.float32)
    bn_gamma = jnp.ones((2,), dtype=jnp.float32)   # PyTorch BatchNorm2d default
    bn_beta = jnp.zeros((2,), dtype=jnp.float32)

    out = model_forward(x, conv2_w, conv2_b, bn_gamma, bn_beta)
    out = jax.block_until_ready(out)

    # Pure-JAX reference for sanity check.
    y = jnp.einsum("oc,nchw->nohw", conv2_w.reshape(C_out, C_in), x) \
        + conv2_b[None, :, None, None]
    mean = y.mean(axis=(0, 2, 3), keepdims=True)
    var = ((y - mean) ** 2).mean(axis=(0, 2, 3), keepdims=True)
    ref = jax.nn.sigmoid((y - mean) / jnp.sqrt(var + BN_EPS))

    assert out.shape == (N, C_out, H, W), out.shape
    assert out.dtype == jnp.float32
    assert jnp.allclose(out, ref, atol=1e-5, rtol=1e-5), float(
        jnp.max(jnp.abs(out - ref))
    )

    print("KERNEL_OK")
</pallas_src>

<mosaic_0001>
module attributes {stable_mosaic.version = 11 : i64} {
  func.func @conv1x1_bn_sigmoid_kernel(%arg0: memref<2x2x256xf32, #tpu.memory_space<vmem>>, %arg1: memref<8xf32, #tpu.memory_space<smem>>, %arg2: memref<4xf32, #tpu.memory_space<smem>>, %arg3: memref<4xf32, #tpu.memory_space<smem>>, %arg4: memref<4xf32, #tpu.memory_space<smem>>, %arg5: memref<2x4x256xf32, #tpu.memory_space<vmem>>) attributes {dimension_semantics = [], scalar_prefetch = 0 : i64, scratch_operands = 0 : i64, tpu.core_type = #tpu.core_type<tc>} {
    %c0 = arith.constant 0 : index
    %c0_0 = arith.constant 0 : index
    %c0_1 = arith.constant 0 : index
    %0 = vector.load %arg0[%c0, %c0_0, %c0_1] : memref<2x2x256xf32, #tpu.memory_space<vmem>>, vector<2x2x256xf32>
    %c0_2 = arith.constant 0 : index
    %1 = memref.load %arg1[%c0_2] : memref<8xf32, #tpu.memory_space<smem>>
    %2 = vector.extract_strided_slice %0 {offsets = [0, 0, 0], sizes = [2, 1, 256], strides = [1, 1, 1]} : vector<2x2x256xf32> to vector<2x1x256xf32>
    %3 = vector.shape_cast %2 : vector<2x1x256xf32> to vector<2x256xf32>
    %4 = vector.broadcast %1 : f32 to vector<2x256xf32>
    %5 = arith.mulf %4, %3 : vector<2x256xf32>
    %c1 = arith.constant 1 : index
    %6 = memref.load %arg1[%c1] : memref<8xf32, #tpu.memory_space<smem>>
    %7 = vector.extract_strided_slice %0 {offsets = [0, 1, 0], sizes = [2, 1, 256], strides = [1, 1, 1]} : vector<2x2x256xf32> to vector<2x1x256xf32>
    %8 = vector.shape_cast %7 : vector<2x1x256xf32> to vector<2x256xf32>
    %9 = vector.broadcast %6 : f32 to vector<2x256xf32>
    %10 = arith.mulf %9, %8 : vector<2x256xf32>
    %11 = arith.addf %5, %10 : vector<2x256xf32>
    %c0_3 = arith.constant 0 : index
    %12 = memref.load %arg2[%c0_3] : memref<4xf32, #tpu.memory_space<smem>>
    %13 = vector.broadcast %12 : f32 to vector<2x256xf32>
    %14 = arith.addf %11, %13 : vector<2x256xf32>
    %15 = vector.shape_cast %14 : vector<2x256xf32> to vector<1x2x256xf32>
    %cst = arith.constant dense<0.000000e+00> : vector<1xf32>
    %16 = vector.multi_reduction <add>, %15, %cst [1, 2] : vector<1x2x256xf32> to vector<1xf32>
    %17 = vector.shape_cast %16 : vector<1xf32> to vector<1x1x1xf32>
    %18 = vector.extract %17[0, 0, 0] : f32 from vector<1x1x1xf32>
    %19 = vector.broadcast %18 : f32 to vector<1x1xf32>
    %20 = arith.mulf %14, %14 : vector<2x256xf32>
    %21 = vector.shape_cast %20 : vector<2x256xf32> to vector<1x2x256xf32>
    %cst_4 = arith.constant dense<0.000000e+00> : vector<1xf32>
    %22 = vector.multi_reduction <add>, %21, %cst_4 [1, 2] : vector<1x2x256xf32> to vector<1xf32>
    %23 = vector.shape_cast %22 : vector<1xf32> to vector<1x1x1xf32>
    %24 = vector.extract %23[0, 0, 0] : f32 from vector<1x1x1xf32>
    %25 = vector.broadcast %24 : f32 to vector<1x1xf32>
    %cst_5 = arith.constant 0.001953125 : f32
    %26 = vector.broadcast %cst_5 : f32 to vector<1x1xf32>
    %27 = arith.mulf %19, %26 : vector<1x1xf32>
    %cst_6 = arith.constant 0.001953125 : f32
    %28 = vector.broadcast %cst_6 : f32 to vector<1x1xf32>
    %29 = arith.mulf %25, %28 : vector<1x1xf32>
    %30 = arith.mulf %27, %27 : vector<1x1xf32>
    %31 = arith.subf %29, %30 : vector<1x1xf32>
    %cst_7 = arith.constant 0.000000e+00 : f32
    %32 = vector.broadcast %cst_7 : f32 to vector<1x1xf32>
    %33 = arith.maximumf %31, %32 : vector<1x1xf32>
    %c0_8 = arith.constant 0 : index
    %34 = memref.load %arg3[%c0_8] : memref<4xf32, #tpu.memory_space<smem>>
    %cst_9 = arith.constant 9.99999974E-6 : f32
    %35 = vector.broadcast %cst_9 : f32 to vector<1x1xf32>
    %36 = arith.addf %33, %35 : vector<1x1xf32>
    %37 = math.rsqrt %36 : vector<1x1xf32>
    %38 = vector.broadcast %34 : f32 to vector<1x1xf32>
    %39 = arith.mulf %38, %37 : vector<1x1xf32>
    %c0_10 = arith.constant 0 : index
    %40 = memref.load %arg4[%c0_10] : memref<4xf32, #tpu.memory_space<smem>>
    %41 = arith.mulf %27, %39 : vector<1x1xf32>
    %42 = vector.broadcast %40 : f32 to vector<1x1xf32>
    %43 = arith.subf %42, %41 : vector<1x1xf32>
    %44 = vector.broadcast %39 : vector<1x1xf32> to vector<2x256xf32>
    %45 = arith.mulf %14, %44 : vector<2x256xf32>
    %46 = vector.broadcast %43 : vector<1x1xf32> to vector<2x256xf32>
    %47 = arith.addf %45, %46 : vector<2x256xf32>
    %cst_11 = arith.constant 5.000000e-01 : f32
    %48 = vector.broadcast %cst_11 : f32 to vector<2x256xf32>
    %49 = arith.mulf %48, %47 : vector<2x256xf32>
    %50 = math.tanh %49 : vector<2x256xf32>
    %cst_12 = arith.constant 5.000000e-01 : f32
    %51 = vector.broadcast %cst_12 : f32 to vector<2x256xf32>
    %52 = arith.mulf %51, %50 : vector<2x256xf32>
    %cst_13 = arith.constant 5.000000e-01 : f32
    %53 = vector.broadcast %cst_13 : f32 to vector<2x256xf32>
    %54 = arith.addf %52, %53 : vector<2x256xf32>
    %c0_14 = arith.constant 0 : index
    %c0_15 = arith.constant 0 : index
    %c0_16 = arith.constant 0 : index
    %55 = vector.load %arg5[%c0_14, %c0_15, %c0_16] : memref<2x4x256xf32, #tpu.memory_space<vmem>>, vector<2x1x256xf32>
    %56 = vector.shape_cast %55 : vector<2x1x256xf32> to vector<2x256xf32>
    %57 = vector.shape_cast %54 : vector<2x256xf32> to vector<2x1x256xf32>
    tpu.vector_store %arg5[%c0_14, %c0_15, %c0_16], %57 {strides = array<i32>} : memref<2x4x256xf32, #tpu.memory_space<vmem>>, vector<2x1x256xf32>,
    %c2 = arith.constant 2 : index
    %58 = memref.load %arg1[%c2] : memref<8xf32, #tpu.memory_space<smem>>
    %59 = vector.extract_strided_slice %0 {offsets = [0, 0, 0], sizes = [2, 1, 256], strides = [1, 1, 1]} : vector<2x2x256xf32> to vector<2x1x256xf32>
    %60 = vector.shape_cast %59 : vector<2x1x256xf32> to vector<2x256xf32>
    %61 = vector.broadcast %58 : f32 to vector<2x256xf32>
    %62 = arith.mulf %61, %60 : vector<2x256xf32>
    %c3 = arith.constant 3 : index
    %63 = memref.load %arg1[%c3] : memref<8xf32, #tpu.memory_space<smem>>
    %64 = vector.extract_strided_slice %0 {offsets = [0, 1, 0], sizes = [2, 1, 256], strides = [1, 1, 1]} : vector<2x2x256xf32> to vector<2x1x256xf32>
    %65 = vector.shape_cast %64 : vector<2x1x256xf32> to vector<2x256xf32>
    %66 = vector.broadcast %63 : f32 to vector<2x256xf32>
    %67 = arith.mulf %66, %65 : vector<2x256xf32>
    %68 = arith.addf %62, %67 : vector<2x256xf32>
    %c1_17 = arith.constant 1 : index
    %69 = memref.load %arg2[%c1_17] : memref<4xf32, #tpu.memory_space<smem>>
    %70 = vector.broadcast %69 : f32 to vector<2x256xf32>
    %71 = arith.addf %68, %70 : vector<2x256xf32>
    %72 = vector.shape_cast %71 : vector<2x256xf32> to vector<1x2x256xf32>
    %cst_18 = arith.constant dense<0.000000e+00> : vector<1xf32>
    %73 = vector.multi_reduction <add>, %72, %cst_18 [1, 2] : vector<1x2x256xf32> to vector<1xf32>
    %74 = vector.shape_cast %73 : vector<1xf32> to vector<1x1x1xf32>
    %75 = vector.extract %74[0, 0, 0] : f32 from vector<1x1x1xf32>
    %76 = vector.broadcast %75 : f32 to vector<1x1xf32>
    %77 = arith.mulf %71, %71 : vector<2x256xf32>
    %78 = vector.shape_cast %77 : vector<2x256xf32> to vector<1x2x256xf32>
    %cst_19 = arith.constant dense<0.000000e+00> : vector<1xf32>
    %79 = vector.multi_reduction <add>, %78, %cst_19 [1, 2] : vector<1x2x256xf32> to vector<1xf32>
    %80 = vector.shape_cast %79 : vector<1xf32> to vector<1x1x1xf32>
    %81 = vector.extract %80[0, 0, 0] : f32 from vector<1x1x1xf32>
    %82 = vector.broadcast %81 : f32 to vector<1x1xf32>
    %cst_20 = arith.constant 0.001953125 : f32
    %83 = vector.broadcast %cst_20 : f32 to vector<1x1xf32>
    %84 = arith.mulf %76, %83 : vector<1x1xf32>
    %cst_21 = arith.constant 0.001953125 : f32
    %85 = vector.broadcast %cst_21 : f32 to vector<1x1xf32>
    %86 = arith.mulf %82, %85 : vector<1x1xf32>
    %87 = arith.mulf %84, %84 : vector<1x1xf32>
    %88 = arith.subf %86, %87 : vector<1x1xf32>
    %cst_22 = arith.constant 0.000000e+00 : f32
    %89 = vector.broadcast %cst_22 : f32 to vector<1x1xf32>
    %90 = arith.maximumf %88, %89 : vector<1x1xf32>
    %c1_23 = arith.constant 1 : index
    %91 = memref.load %arg3[%c1_23] : memref<4xf32, #tpu.memory_space<smem>>
    %cst_24 = arith.constant 9.99999974E-6 : f32
    %92 = vector.broadcast %cst_24 : f32 to vector<1x1xf32>
    %93 = arith.addf %90, %92 : vector<1x1xf32>
    %94 = math.rsqrt %93 : vector<1x1xf32>
    %95 = vector.broadcast %91 : f32 to vector<1x1xf32>
    %96 = arith.mulf %95, %94 : vector<1x1xf32>
    %c1_25 = arith.constant 1 : index
    %97 = memref.load %arg4[%c1_25] : memref<4xf32, #tpu.memory_space<smem>>
    %98 = arith.mulf %84, %96 : vector<1x1xf32>
    %99 = vector.broadcast %97 : f32 to vector<1x1xf32>
    %100 = arith.subf %99, %98 : vector<1x1xf32>
    %101 = vector.broadcast %96 : vector<1x1xf32> to vector<2x256xf32>
    %102 = arith.mulf %71, %101 : vector<2x256xf32>
    %103 = vector.broadcast %100 : vector<1x1xf32> to vector<2x256xf32>
    %104 = arith.addf %102, %103 : vector<2x256xf32>
    %cst_26 = arith.constant 5.000000e-01 : f32
    %105 = vector.broadcast %cst_26 : f32 to vector<2x256xf32>
    %106 = arith.mulf %105, %104 : vector<2x256xf32>
    %107 = math.tanh %106 : vector<2x256xf32>
    %cst_27 = arith.constant 5.000000e-01 : f32
    %108 = vector.broadcast %cst_27 : f32 to vector<2x256xf32>
    %109 = arith.mulf %108, %107 : vector<2x256xf32>
    %cst_28 = arith.constant 5.000000e-01 : f32
    %110 = vector.broadcast %cst_28 : f32 to vector<2x256xf32>
    %111 = arith.addf %109, %110 : vector<2x256xf32>
    %c0_29 = arith.constant 0 : index
    %c1_30 = arith.constant 1 : index
    %c0_31 = arith.constant 0 : index
    %112 = vector.load %arg5[%c0_29, %c1_30, %c0_31] : memref<2x4x256xf32, #tpu.memory_space<vmem>>, vector<2x1x256xf32>
    %113 = vector.shape_cast %112 : vector<2x1x256xf32> to vector<2x256xf32>
    %114 = vector.shape_cast %111 : vector<2x256xf32> to vector<2x1x256xf32>
    tpu.vector_store %arg5[%c0_29, %c1_30, %c0_31], %114 {strides = array<i32>} : memref<2x4x256xf32, #tpu.memory_space<vmem>>, vector<2x1x256xf32>,
    %c4 = arith.constant 4 : index
    %115 = memref.load %arg1[%c4] : memref<8xf32, #tpu.memory_space<smem>>
    %116 = vector.extract_strided_slice %0 {offsets = [0, 0, 0], sizes = [2, 1, 256], strides = [1, 1, 1]} : vector<2x2x256xf32> to vector<2x1x256xf32>
    %117 = vector.shape_cast %116 : vector<2x1x256xf32> to vector<2x256xf32>
    %118 = vector.broadcast %115 : f32 to vector<2x256xf32>
    %119 = arith.mulf %118, %117 : vector<2x256xf32>
    %c5 = arith.constant 5 : index
    %120 = memref.load %arg1[%c5] : memref<8xf32, #tpu.memory_space<smem>>
    %121 = vector.extract_strided_slice %0 {offsets = [0, 1, 0], sizes = [2, 1, 256], strides = [1, 1, 1]} : vector<2x2x256xf32> to vector<2x1x256xf32>
    %122 = vector.shape_cast %121 : vector<2x1x256xf32> to vector<2x256xf32>
    %123 = vector.broadcast %120 : f32 to vector<2x256xf32>
    %124 = arith.mulf %123, %122 : vector<2x256xf32>
    %125 = arith.addf %119, %124 : vector<2x256xf32>
    %c2_32 = arith.constant 2 : index
    %126 = memref.load %arg2[%c2_32] : memref<4xf32, #tpu.memory_space<smem>>
    %127 = vector.broadcast %126 : f32 to vector<2x256xf32>
    %128 = arith.addf %125, %127 : vector<2x256xf32>
    %129 = vector.shape_cast %128 : vector<2x256xf32> to vector<1x2x256xf32>
    %cst_33 = arith.constant dense<0.000000e+00> : vector<1xf32>
    %130 = vector.multi_reduction <add>, %129, %cst_33 [1, 2] : vector<1x2x256xf32> to vector<1xf32>
    %131 = vector.shape_cast %130 : vector<1xf32> to vector<1x1x1xf32>
    %132 = vector.extract %131[0, 0, 0] : f32 from vector<1x1x1xf32>
    %133 = vector.broadcast %132 : f32 to vector<1x1xf32>
    %134 = arith.mulf %128, %128 : vector<2x256xf32>
    %135 = vector.shape_cast %134 : vector<2x256xf32> to vector<1x2x256xf32>
    %cst_34 = arith.constant dense<0.000000e+00> : vector<1xf32>
    %136 = vector.multi_reduction <add>, %135, %cst_34 [1, 2] : vector<1x2x256xf32> to vector<1xf32>
    %137 = vector.shape_cast %136 : vector<1xf32> to vector<1x1x1xf32>
    %138 = vector.extract %137[0, 0, 0] : f32 from vector<1x1x1xf32>
    %139 = vector.broadcast %138 : f32 to vector<1x1xf32>
    %cst_35 = arith.constant 0.001953125 : f32
    %140 = vector.broadcast %cst_35 : f32 to vector<1x1xf32>
    %141 = arith.mulf %133, %140 : vector<1x1xf32>
    %cst_36 = arith.constant 0.001953125 : f32
    %142 = vector.broadcast %cst_36 : f32 to vector<1x1xf32>
    %143 = arith.mulf %139, %142 : vector<1x1xf32>
    %144 = arith.mulf %141, %141 : vector<1x1xf32>
    %145 = arith.subf %143, %144 : vector<1x1xf32>
    %cst_37 = arith.constant 0.000000e+00 : f32
    %146 = vector.broadcast %cst_37 : f32 to vector<1x1xf32>
    %147 = arith.maximumf %145, %146 : vector<1x1xf32>
    %c2_38 = arith.constant 2 : index
    %148 = memref.load %arg3[%c2_38] : memref<4xf32, #tpu.memory_space<smem>>
    %cst_39 = arith.constant 9.99999974E-6 : f32
    %149 = vector.broadcast %cst_39 : f32 to vector<1x1xf32>
    %150 = arith.addf %147, %149 : vector<1x1xf32>
    %151 = math.rsqrt %150 : vector<1x1xf32>
    %152 = vector.broadcast %148 : f32 to vector<1x1xf32>
    %153 = arith.mulf %152, %151 : vector<1x1xf32>
    %c2_40 = arith.constant 2 : index
    %154 = memref.load %arg4[%c2_40] : memref<4xf32, #tpu.memory_space<smem>>
    %155 = arith.mulf %141, %153 : vector<1x1xf32>
    %156 = vector.broadcast %154 : f32 to vector<1x1xf32>
    %157 = arith.subf %156, %155 : vector<1x1xf32>
    %158 = vector.broadcast %153 : vector<1x1xf32> to vector<2x256xf32>
    %159 = arith.mulf %128, %158 : vector<2x256xf32>
    %160 = vector.broadcast %157 : vector<1x1xf32> to vector<2x256xf32>
    %161 = arith.addf %159, %160 : vector<2x256xf32>
    %cst_41 = arith.constant 5.000000e-01 : f32
    %162 = vector.broadcast %cst_41 : f32 to vector<2x256xf32>
    %163 = arith.mulf %162, %161 : vector<2x256xf32>
    %164 = math.tanh %163 : vector<2x256xf32>
    %cst_42 = arith.constant 5.000000e-01 : f32
    %165 = vector.broadcast %cst_42 : f32 to vector<2x256xf32>
    %166 = arith.mulf %165, %164 : vector<2x256xf32>
    %cst_43 = arith.constant 5.000000e-01 : f32
    %167 = vector.broadcast %cst_43 : f32 to vector<2x256xf32>
    %168 = arith.addf %166, %167 : vector<2x256xf32>
    %c0_44 = arith.constant 0 : index
    %c2_45 = arith.constant 2 : index
    %c0_46 = arith.constant 0 : index
    %169 = vector.load %arg5[%c0_44, %c2_45, %c0_46] : memref<2x4x256xf32, #tpu.memory_space<vmem>>, vector<2x1x256xf32>
    %170 = vector.shape_cast %169 : vector<2x1x256xf32> to vector<2x256xf32>
    %171 = vector.shape_cast %168 : vector<2x256xf32> to vector<2x1x256xf32>
    tpu.vector_store %arg5[%c0_44, %c2_45, %c0_46], %171 {strides = array<i32>} : memref<2x4x256xf32, #tpu.memory_space<vmem>>, vector<2x1x256xf32>,
    %c6 = arith.constant 6 : index
    %172 = memref.load %arg1[%c6] : memref<8xf32, #tpu.memory_space<smem>>
    %173 = vector.extract_strided_slice %0 {offsets = [0, 0, 0], sizes = [2, 1, 256], strides = [1, 1, 1]} : vector<2x2x256xf32> to vector<2x1x256xf32>
    %174 = vector.shape_cast %173 : vector<2x1x256xf32> to vector<2x256xf32>
    %175 = vector.broadcast %172 : f32 to vector<2x256xf32>
    %176 = arith.mulf %175, %174 : vector<2x256xf32>
    %c7 = arith.constant 7 : index
    %177 = memref.load %arg1[%c7] : memref<8xf32, #tpu.memory_space<smem>>
    %178 = vector.extract_strided_slice %0 {offsets = [0, 1, 0], sizes = [2, 1, 256], strides = [1, 1, 1]} : vector<2x2x256xf32> to vector<2x1x256xf32>
    %179 = vector.shape_cast %178 : vector<2x1x256xf32> to vector<2x256xf32>
    %180 = vector.broadcast %177 : f32 to vector<2x256xf32>
    %181 = arith.mulf %180, %179 : vector<2x256xf32>
    %182 = arith.addf %176, %181 : vector<2x256xf32>
    %c3_47 = arith.constant 3 : index
    %183 = memref.load %arg2[%c3_47] : memref<4xf32, #tpu.memory_space<smem>>
    %184 = vector.broadcast %183 : f32 to vector<2x256xf32>
    %185 = arith.addf %182, %184 : vector<2x256xf32>
    %186 = vector.shape_cast %185 : vector<2x256xf32> to vector<1x2x256xf32>
    %cst_48 = arith.constant dense<0.000000e+00> : vector<1xf32>
    %187 = vector.multi_reduction <add>, %186, %cst_48 [1, 2] : vector<1x2x256xf32> to vector<1xf32>
    %188 = vector.shape_cast %187 : vector<1xf32> to vector<1x1x1xf32>
    %189 = vector.extract %188[0, 0, 0] : f32 from vector<1x1x1xf32>
    %190 = vector.broadcast %189 : f32 to vector<1x1xf32>
    %191 = arith.mulf %185, %185 : vector<2x256xf32>
    %192 = vector.shape_cast %191 : vector<2x256xf32> to vector<1x2x256xf32>
    %cst_49 = arith.constant dense<0.000000e+00> : vector<1xf32>
    %193 = vector.multi_reduction <add>, %192, %cst_49 [1, 2] : vector<1x2x256xf32> to vector<1xf32>
    %194 = vector.shape_cast %193 : vector<1xf32> to vector<1x1x1xf32>
    %195 = vector.extract %194[0, 0, 0] : f32 from vector<1x1x1xf32>
    %196 = vector.broadcast %195 : f32 to vector<1x1xf32>
    %cst_50 = arith.constant 0.001953125 : f32
    %197 = vector.broadcast %cst_50 : f32 to vector<1x1xf32>
    %198 = arith.mulf %190, %197 : vector<1x1xf32>
    %cst_51 = arith.constant 0.001953125 : f32
    %199 = vector.broadcast %cst_51 : f32 to vector<1x1xf32>
    %200 = arith.mulf %196, %199 : vector<1x1xf32>
    %201 = arith.mulf %198, %198 : vector<1x1xf32>
    %202 = arith.subf %200, %201 : vector<1x1xf32>
    %cst_52 = arith.constant 0.000000e+00 : f32
    %203 = vector.broadcast %cst_52 : f32 to vector<1x1xf32>
    %204 = arith.maximumf %202, %203 : vector<1x1xf32>
    %c3_53 = arith.constant 3 : index
    %205 = memref.load %arg3[%c3_53] : memref<4xf32, #tpu.memory_space<smem>>
    %cst_54 = arith.constant 9.99999974E-6 : f32
    %206 = vector.broadcast %cst_54 : f32 to vector<1x1xf32>
    %207 = arith.addf %204, %206 : vector<1x1xf32>
    %208 = math.rsqrt %207 : vector<1x1xf32>
    %209 = vector.broadcast %205 : f32 to vector<1x1xf32>
    %210 = arith.mulf %209, %208 : vector<1x1xf32>
    %c3_55 = arith.constant 3 : index
    %211 = memref.load %arg4[%c3_55] : memref<4xf32, #tpu.memory_space<smem>>
    %212 = arith.mulf %198, %210 : vector<1x1xf32>
    %213 = vector.broadcast %211 : f32 to vector<1x1xf32>
    %214 = arith.subf %213, %212 : vector<1x1xf32>
    %215 = vector.broadcast %210 : vector<1x1xf32> to vector<2x256xf32>
    %216 = arith.mulf %185, %215 : vector<2x256xf32>
    %217 = vector.broadcast %214 : vector<1x1xf32> to vector<2x256xf32>
    %218 = arith.addf %216, %217 : vector<2x256xf32>
    %cst_56 = arith.constant 5.000000e-01 : f32
    %219 = vector.broadcast %cst_56 : f32 to vector<2x256xf32>
    %220 = arith.mulf %219, %218 : vector<2x256xf32>
    %221 = math.tanh %220 : vector<2x256xf32>
    %cst_57 = arith.constant 5.000000e-01 : f32
    %222 = vector.broadcast %cst_57 : f32 to vector<2x256xf32>
    %223 = arith.mulf %222, %221 : vector<2x256xf32>
    %cst_58 = arith.constant 5.000000e-01 : f32
    %224 = vector.broadcast %cst_58 : f32 to vector<2x256xf32>
    %225 = arith.addf %223, %224 : vector<2x256xf32>
    %c0_59 = arith.constant 0 : index
    %c3_60 = arith.constant 3 : index
    %c0_61 = arith.constant 0 : index
    %226 = vector.load %arg5[%c0_59, %c3_60, %c0_61] : memref<2x4x256xf32, #tpu.memory_space<vmem>>, vector<2x1x256xf32>
    %227 = vector.shape_cast %226 : vector<2x1x256xf32> to vector<2x256xf32>
    %228 = vector.shape_cast %225 : vector<2x256xf32> to vector<2x1x256xf32>
    tpu.vector_store %arg5[%c0_59, %c3_60, %c0_61], %228 {strides = array<i32>} : memref<2x4x256xf32, #tpu.memory_space<vmem>>, vector<2x1x256xf32>,
    return
  }
}

</mosaic_0001>

<bundles_post_ra>
// kernel: tpu_custom_call.1
= control target key start
LH: loop header
LB: loop body
LE: loop exit
PB: predicated region body
PF: predicated region fallthrough
CT: control target
= control target key end

     0   :  { %10 = vsyncpa [#allocation3], 0  ;;  %s1073_s0 = inlined_call_operand.hbm [shape: f32[2,2,256], index: 0, kind: input, shape index: {}]   ;;  %s1074_s1 = inlined_call_operand.hbm [shape: f32[8], index: 1, kind: input, shape index: {}]   ;;  %s1075_s2 = inlined_call_operand.vmem [shape: f32[4], index: 2, kind: input, shape index: {}]   ;;  %s1076_s3 = inlined_call_operand.vmem [shape: f32[4], index: 3, kind: input, shape index: {}]   ;;  %s1077_s4 = inlined_call_operand.vmem [shape: f32[4], index: 4, kind: input, shape index: {}]   ;;  %s1078_s5 = inlined_call_operand.hbm [shape: f32[2,4,256], index: 5, kind: output, shape index: {}]  }
   0x1   :  { %11 = vsyncpa [#allocation5], 0 }
   0x2   :  { %12 = vsyncpa [#allocation6], 0 }
   0x3   :  { %13 = vsyncpa [#allocation10], 0  ;;  %s51_s20 = sshll.u32 %s1076_s3, 4  ;;  %s52_s20 = int_to_ptr.vmem [resolvable:$true] %s51_s20 }
   0x4   :  { %14 = vsyncpa [#allocation4], 0  ;;  %s19_s23 = sshll.u32 %s1073_s0, 4  ;;  %s796_s24 = smov [#allocation9]   ;;  %s20_s23 = int_to_ptr.hbm [resolvable:$true] %s19_s23 }
   0x5   :  { %54 = dma.vmem_to_smem %s52_s20, 16, %s796_s24, [#allocation10]  }
   0x6   :  { %s797_s25 = smov [#allocation2]   ;;  %s798_s27 = smov 64  }
   0x7   :  { %s21_s26 = sshll.u32 %s797_s25, 4  ;;  %s799_s28 = smov 4   ;;  %s22_s26 = int_to_ptr.vmem [resolvable:$true] %s21_s26 }
   0x8   :  { %27 = dma.hbm_to_vmem [thread:$0]  %s20_s23, 128, %s22_s26, [#allocation3], %s798_s27, %s798_s27, %s799_s28  }
   0x9   :  { %s33_s6 = sshll.u32 %s1074_s1, 4  ;;  %s42_s8 = sshll.u32 %s1075_s2, 4  ;;  %s34_s6 = int_to_ptr.hbm [resolvable:$true] %s33_s6  ;;  %s43_s8 = int_to_ptr.vmem [resolvable:$true] %s42_s8 }
   0xa   :  { %s800_s9 = smov [#allocation7]   ;;  %s801_s0 = smov [#allocation8]  }
   0xb   :  { %36 = dma.hbm_to_smem %s34_s6, 16, %s800_s9, [#allocation5]  }
   0xc   :  { %45 = dma.vmem_to_smem %s43_s8, 16, %s801_s0, [#allocation6]  }
   0xd   :  { %s60_s12 = sshll.u32 %s1077_s4, 4  ;;  %s802_s13 = smov [#allocation11]   ;;  %s61_s12 = int_to_ptr.vmem [resolvable:$true] %s60_s12 }
   0xe   :  { %63 = dma.vmem_to_smem %s61_s12, 16, %s802_s13, [#allocation10]  }
   0xf   :  { %786 = dma.done.wait [#allocation3], 128  }
  0x10   :  { %787 = vsyncadd [#allocation3], 4294967168 }
  0x11   :  { %788 = dma.done.wait [#allocation5], 16  }
  0x12   :  { %789 = vsyncadd [#allocation5], 4294967280 }
  0x13   :  { %790 = dma.done.wait [#allocation6], 16  }
  0x14   :  { %791 = vsyncadd [#allocation6], 4294967280 }
  0x15   :  { %792 = dma.done.wait [#allocation10], 32  }
  0x16   :  { %793 = vsyncadd [#allocation10], 4294967264 }
  0x17   :  { %84 = sfence }
  0x18   :  { %s619_s1 = sld [smem:[#allocation7 + $0x2]]  ;;  %v853_v0 = vld [vmem:[#allocation2] sm:$0xf]  ;;  %v855_v1 = vld [vmem:[#allocation2 + $0x4] sm:$0xf]  ;;  %vm115_vm0 = vcmask 1041409  }
  0x19   :  { %s620_s2 = sld [smem:[#allocation7 + $0x3]]  ;;  %vm120_vm1 = vcmask 1041408   ;;  %vm202_vm14 = vcmask 1040384   ;;  %vm204_vm15 = vcmask 1042434   ;;  %s803_s12 = smov [#allocation12]  }
  0x1a   :  { %s851_s14 = sld [smem:[#allocation8 + $0x1]]  ;;  %s598_s13 = sshll.u32 %s803_s12, 4  ;;  %s599_s13 = int_to_ptr.vmem [resolvable:$true] %s598_s13 }
  0x1b   :  { %s87_s15 = sld [smem:[#allocation7]] }
  0x1c   :  { %s616_s16 = sld [smem:[#allocation7 + $0x1]] }
  0x1d   :  { %s857_s4 = sld [smem:[#allocation8]] }
  0x1e   :  { %v220_v2 = vstv %s619_s1  ;;  %s626_s17 = sld [smem:[#allocation7 + $0x4]] }
  0x1f   :  { %v224_v3 = vstv %s620_s2  ;;  %s627_s18 = sld [smem:[#allocation7 + $0x5]]  ;;  %v221_v4 = vmul.f32 %v220_v2, %v853_v0  ;;  %v222_v5 = vmul.f32 %v220_v2, %v855_v1 }
  0x20   :  { %v225_v6 = vmul.f32 %v224_v3, %v853_v0  ;;  %v226_v7 = vmul.f32 %v224_v3, %v855_v1  ;;  %s863_s19 = sld [smem:[#allocation8 + $0x2]]  ;;  %v238_v11 = vstv %s851_s14  ;;  %s600_s14 = sshll.u32 %s1078_s5, 4  ;;  %s601_s14 = int_to_ptr.hbm [resolvable:$true] %s600_s14 }
  0x21   :  { %v88_v8 = vstv %s87_s15  ;;  %s904_s20 = sld [smem:[#allocation7 + $0x6]]  ;;  %s804_s5 = smov 128  }
  0x22   :  { %v621_v9 = vrot.slane %v225_v6, 9  ;;  %v622_v10 = vrot.slane %v226_v7, 9  ;;  %v89_v12 = vmul.f32 %v88_v8, %v853_v0  ;;  %v92_v13 = vstv %s616_s16  ;;  %s915_s21 = sld [smem:[#allocation7 + $0x7]]  ;;  %s805_s15 = smov 8  }
  0x23   :  { %v93_v16 = vmul.f32 %v92_v13, %v853_v0  ;;  %v94_v17 = vmul.f32 %v92_v13, %v855_v1  ;;  %v90_v18 = vmul.f32 %v88_v8, %v855_v1  ;;  %v106_v19 = vstv %s857_s4  ;;  %s930_s22 = sld [smem:[#allocation8 + $0x3]] }
  0x24   :  { %v235_v14 = vadd.f32 %v621_v9, %v221_v4  ;;  %v236_v15 = vadd.f32 %v622_v10, %v222_v5  ;;  %v345_v20 = vstv %s626_s17  ;;  %s983_s6 = sld [smem:[#allocation9]] }
  0x25   :  { %v349_v21 = vstv %s627_s18  ;;  %v617_v24 = vrot.slane %v93_v16, 9  ;;  %v618_v25 = vrot.slane %v94_v17, 9  ;;  %v346_v26 = vmul.f32 %v345_v20, %v853_v0  ;;  %s987_s3 = sld [smem:[#allocation9 + $0x1]] }
  0x26   :  { %v871_v22 = vadd.f32 %v238_v11, %v235_v14  ;;  %v873_v23 = vadd.f32 %v238_v11, %v236_v15  ;;  %v347_v27 = vmul.f32 %v345_v20, %v855_v1  ;;  %v350_v28 = vmul.f32 %v349_v21, %v853_v0  ;;  %s989_s7 = sld [smem:[#allocation11]] }
  0x27   :  { %v351_v29 = vmul.f32 %v349_v21, %v855_v1  ;;  %v103_v34 = vadd.f32 %v617_v24, %v89_v12  ;;  %v104_v35 = vadd.f32 %v618_v25, %v90_v18  ;;  %v363_v40 = vstv %s863_s19  ;;  %s991_s8 = sld [smem:[#allocation9 + $0x2]] }
  0x28   :  { %v243_v30 = vperm.slane %v871_v22, 0  ;;  %v244_v31 = vperm.slane %v871_v22, 2  ;;  %v245_v32 = vperm.slane %v873_v23, 0  ;;  %v246_v33 = vperm.slane %v873_v23, 2  ;;  %s993_s9 = sld [smem:[#allocation11 + $0x1]] }
  0x29   :  { %v628_v36 = vrot.slane %v350_v28, 9  ;;  %v629_v37 = vrot.slane %v351_v29, 9  ;;  %v264_v41 = vmul.f32 %v871_v22, %v871_v22  ;;  %v890_v44 = vadd.f32 %v106_v19, %v103_v34  ;;  %s1000_s0 = sld [smem:[#allocation11 + $0x2]] }
  0x2a   :  { %v247_v38 = vsel %vm115_vm0, %v245_v32, %v243_v30  ;;  %v248_v39 = vsel %vm115_vm0, %v246_v33, %v244_v31  ;;  %v892_v45 = vadd.f32 %v106_v19, %v104_v35  ;;  %v265_v49 = vmul.f32 %v873_v23, %v873_v23  ;;  %s1013_s10 = sld [smem:[#allocation9 + $0x3]] }
  0x2b   :  { %v251_v42 = vsel %vm120_vm1, %v247_v38, 0.0  ;;  %v252_v43 = vsel %vm120_vm1, %v248_v39, 0.0  ;;  %v360_v47 = vadd.f32 %v628_v36, %v346_v26  ;;  %v361_v48 = vadd.f32 %v629_v37, %v347_v27  ;;  %s1018_s11 = sld [smem:[#allocation11 + $0x3]] }
  0x2c   :  { %v253_v46 = vadd.f32 %v252_v43, %v251_v42  ;;  %v111_v50 = vperm.slane %v890_v44, 0  ;;  %v112_v51 = vperm.slane %v890_v44, 2  ;;  %v113_v52 = vperm.slane %v892_v45, 0 }
  0x2d   :  { %v114_v53 = vperm.slane %v892_v45, 2  ;;  %v900_v54 = vadd.f32 %v363_v40, %v360_v47  ;;  %v902_v55 = vadd.f32 %v363_v40, %v361_v48  ;;  %v268_v56 = vperm.slane %v264_v41, 0 }
  0x2e   :  { %254 = vadd.xlane.f32.xlu1 %v253_v46  ;;  %v269_v57 = vperm.slane %v264_v41, 2  ;;  %v116_v58 = vsel %vm115_vm0, %v113_v52, %v111_v50  ;;  %v270_v60 = vperm.slane %v265_v49, 0  ;;  %v271_v61 = vperm.slane %v265_v49, 2 }
  0x2f   :  { %v117_v59 = vsel %vm115_vm0, %v114_v53, %v112_v51  ;;  %v121_v62 = vsel %vm120_vm1, %v116_v58, 0.0  ;;  %v368_v2 = vperm.slane %v900_v54, 0  ;;  %v369_v3 = vperm.slane %v900_v54, 2 }
  0x30   :  { %v122_v63 = vsel %vm120_vm1, %v117_v59, 0.0  ;;  %v370_v5 = vperm.slane %v902_v55, 0  ;;  %v371_v6 = vperm.slane %v902_v55, 2  ;;  %v272_v7 = vsel %vm115_vm0, %v270_v60, %v268_v56 }
  0x31   :  { %v123_v4 = vadd.f32 %v122_v63, %v121_v62  ;;  %v273_v8 = vsel %vm115_vm0, %v271_v61, %v269_v57  ;;  %v276_v9 = vsel %vm120_vm1, %v272_v7, 0.0  ;;  %v134_v10 = vmul.f32 %v890_v44, %v890_v44 }
  0x32   :  { %v135_v11 = vmul.f32 %v892_v45, %v892_v45  ;;  %v372_v12 = vsel %vm115_vm0, %v370_v5, %v368_v2  ;;  %v373_v13 = vsel %vm115_vm0, %v371_v6, %v369_v3  ;;  %v277_v14 = vsel %vm120_vm1, %v273_v8, 0.0 }
  0x33   :  { %124 = vadd.xlane.f32.xlu0 %v123_v4  ;;  %v389_v15 = vmul.f32 %v900_v54, %v900_v54  ;;  %v376_v16 = vsel %vm120_vm1, %v372_v12, 0.0  ;;  %v377_v17 = vsel %vm120_vm1, %v373_v13, 0.0  ;;  %v278_v18 = vadd.f32 %v277_v14, %v276_v9 }
  0x34   :  { %v138_v19 = vperm.slane %v134_v10, 0  ;;  %v378_v20 = vadd.f32 %v377_v17, %v376_v16  ;;  %v139_v21 = vperm.slane %v134_v10, 2  ;;  %v140_v24 = vperm.slane %v135_v11, 0 }
  0x35   :  { %v141_v25 = vperm.slane %v135_v11, 2  ;;  %v390_v26 = vmul.f32 %v902_v55, %v902_v55  ;;  %v393_v27 = vperm.slane %v389_v15, 0  ;;  %v394_v28 = vperm.slane %v389_v15, 2 }
  0x36   :  { %279 = vadd.xlane.f32.xlu1 %v278_v18  ;;  %v470_v29 = vstv %s904_s20  ;;  %379 = vadd.xlane.f32.xlu2 %v378_v20  ;;  %v142_v30 = vsel %vm115_vm0, %v140_v24, %v138_v19  ;;  %v474_v39 = vstv %s915_s21  ;;  %v488_v51 = vstv %s930_s22 }
  0x37   :  { %v143_v31 = vsel %vm115_vm0, %v141_v25, %v139_v21  ;;  %v146_v32 = vsel %vm120_vm1, %v142_v30, 0.0  ;;  %v395_v34 = vperm.slane %v390_v26, 0  ;;  %v396_v35 = vperm.slane %v390_v26, 2 }
  0x38   :  { %v147_v33 = vsel %vm120_vm1, %v143_v31, 0.0  ;;  %v471_v37 = vmul.f32 %v470_v29, %v853_v0  ;;  %v472_v38 = vmul.f32 %v470_v29, %v855_v1  ;;  %v475_v42 = vmul.f32 %v474_v39, %v853_v0 }
  0x39   :  { %v148_v36 = vadd.f32 %v147_v33, %v146_v32  ;;  %v397_v40 = vsel %vm115_vm0, %v395_v34, %v393_v27  ;;  %v398_v41 = vsel %vm115_vm0, %v396_v35, %v394_v28  ;;  %v476_v43 = vmul.f32 %v474_v39, %v855_v1 }
  0x3a   :  { %v401_v46 = vsel %vm120_vm1, %v397_v40, 0.0  ;;  %v402_v47 = vsel %vm120_vm1, %v398_v41, 0.0  ;;  %v635_v49 = vrot.slane %v475_v42, 9 }
  0x3b   :  { %149 = vadd.xlane.f32.xlu0 %v148_v36  ;;  %v403_v48 = vadd.f32 %v402_v47, %v401_v46  ;;  %v636_v50 = vrot.slane %v476_v43, 9 }
  0x3c   :  { %v485_v52 = vadd.f32 %v635_v49, %v471_v37 }
  0x3d   :  { %v486_v53 = vadd.f32 %v636_v50, %v472_v38 }
  0x3e   :  { %404 = vadd.xlane.f32.xlu2 %v403_v48  ;;  %v949_v56 = vadd.f32 %v488_v51, %v485_v52 }
  0x3f   :  { %v951_v57 = vadd.f32 %v488_v51, %v486_v53 }
  0x40   :  { %v514_v0 = vmul.f32 %v949_v56, %v949_v56  ;;  %v493_v58 = vperm.slane %v949_v56, 0  ;;  %v494_v59 = vperm.slane %v949_v56, 2 }
  0x41   :  { %v515_v1 = vmul.f32 %v951_v57, %v951_v57  ;;  %v495_v60 = vperm.slane %v951_v57, 0  ;;  %v496_v61 = vperm.slane %v951_v57, 2 }
  0x42   :  { %v518_v62 = vperm.slane %v514_v0, 0  ;;  %v519_v63 = vperm.slane %v514_v0, 2 }
  0x43   :  { %v520_v2 = vperm.slane %v515_v1, 0  ;;  %v521_v3 = vperm.slane %v515_v1, 2  ;;  %v497_v4 = vsel %vm115_vm0, %v495_v60, %v493_v58  ;;  %v498_v5 = vsel %vm115_vm0, %v496_v61, %v494_v59 }
  0x44   :  { %v501_v8 = vsel %vm120_vm1, %v497_v4, 0.0  ;;  %v502_v9 = vsel %vm120_vm1, %v498_v5, 0.0 }
  0x45   :  { %v522_v6 = vsel %vm115_vm0, %v520_v2, %v518_v62  ;;  %v523_v7 = vsel %vm115_vm0, %v521_v3, %v519_v63  ;;  %v503_v12 = vadd.f32 %v502_v9, %v501_v8 }
  0x46   :  { %v526_v10 = vsel %vm120_vm1, %v522_v6, 0.0  ;;  %v527_v11 = vsel %vm120_vm1, %v523_v7, 0.0 }
  0x47   :  { %v528_v13 = vadd.f32 %v527_v11, %v526_v10  ;;  %504 = vadd.xlane.f32.xlu0 %v503_v12 }
  0x49   :  { %529 = vadd.xlane.f32.xlu1 %v528_v13 }
  0xa1   :  { %v255_v14 = vpop.xlane.xlu1 %254 }
  0xa2   :  { %v256_v15 = vrot.slane %v255_v14, 4 }
  0xa4   :  { %v257_v20 = vadd.f32 %v256_v15, %v255_v14 }
  0xa6   :  { %v125_v16 = vpop.xlane.xlu0 %124  ;;  %v258_v30 = vrot.slane %v257_v20, 2 }
  0xa7   :  { %v126_v17 = vrot.slane %v125_v16, 4 }
  0xa8   :  { %v259_v40 = vadd.f32 %v258_v30, %v257_v20 }
  0xa9   :  { %v127_v18 = vadd.f32 %v126_v17, %v125_v16  ;;  %v280_v19 = vpop.xlane.xlu1 %279  ;;  %v380_v21 = vpop.xlane.xlu2 %379 }
  0xaa   :  { %v281_v24 = vrot.slane %v280_v19, 4  ;;  %v381_v26 = vrot.slane %v380_v21, 4  ;;  %v260_v49 = vrot.slane %v259_v40, 1 }
  0xab   :  { %v128_v25 = vrot.slane %v127_v18, 2 }
  0xac   :  { %v282_v27 = vadd.f32 %v281_v24, %v280_v19  ;;  %v382_v28 = vadd.f32 %v381_v26, %v380_v21  ;;  %v261_v58 = vadd.f32 %v260_v49, %v259_v40 }
  0xad   :  { %v129_v29 = vadd.f32 %v128_v25, %v127_v18 }
  0xae   :  { %v283_v31 = vrot.slane %v282_v27, 2  ;;  %v150_v32 = vpop.xlane.xlu0 %149  ;;  %v383_v35 = vrot.slane %v382_v28, 2 }
  0xaf   :  { %v151_v33 = vrot.slane %v150_v32, 4  ;;  %v130_v34 = vrot.slane %v129_v29, 1 }
  0xb0   :  { %v284_v38 = vadd.f32 %v283_v31, %v282_v27  ;;  %v384_v43 = vadd.f32 %v383_v35, %v382_v28 }
  0xb1   :  { %v152_v36 = vadd.f32 %v151_v33, %v150_v32  ;;  %v131_v37 = vadd.f32 %v130_v34, %v129_v29  ;;  %v405_v39 = vpop.xlane.xlu2 %404 }
  0xb2   :  { %v406_v42 = vrot.slane %v405_v39, 4  ;;  %v285_v48 = vrot.slane %v284_v38, 1  ;;  %v385_v52 = vrot.slane %v384_v43, 1 }
  0xb3   :  { %v153_v41 = vrot.slane %v152_v36, 2  ;;  %640 = vpush %v131_v37 }
  0xb4   :  { %v407_v46 = vadd.f32 %v406_v42, %v405_v39  ;;  %v286_v1 = vadd.f32 %v285_v48, %v284_v38  ;;  %v386_v61 = vadd.f32 %v385_v52, %v384_v43 }
  0xb5   :  { %v154_v47 = vadd.f32 %v153_v41, %v152_v36 }
  0xb6   :  { %v408_v50 = vrot.slane %v407_v46, 2 }
  0xb7   :  { %v155_v51 = vrot.slane %v154_v47, 1 }
  0xb8   :  { %v409_v53 = vadd.f32 %v408_v50, %v407_v46 }
  0xb9   :  { %v156_v0 = vadd.f32 %v155_v51, %v154_v47 }
  0xba   :  { %v410_v59 = vrot.slane %v409_v53, 1  ;;  %v505_v60 = vpop.xlane.xlu0 %504 }
  0xbb   :  { %642 = vpush %v156_v0  ;;  %v506_v63 = vrot.slane %v505_v60, 4 }
  0xbc   :  { %644 = vpush %v261_v58  ;;  %v530_v62 = vpop.xlane.xlu1 %529  ;;  %v411_v2 = vadd.f32 %v410_v59, %v409_v53 }
  0xbd   :  { %646 = vpush %v286_v1  ;;  %v531_v3 = vrot.slane %v530_v62, 4  ;;  %v507_v4 = vadd.f32 %v506_v63, %v505_v60 }
  0xbe   :  { %648 = vpush %v386_v61 }
  0xbf   :  { %650 = vpush %v411_v2  ;;  %v532_v5 = vadd.f32 %v531_v3, %v530_v62  ;;  %v508_v6 = vrot.slane %v507_v4, 2  ;;  %v176_v3 = vstv %s983_s6 }
  0xc1   :  { %v533_v7 = vrot.slane %v532_v5, 2  ;;  %v509_v8 = vadd.f32 %v508_v6, %v507_v4 }
  0xc3   :  { %v534_v9 = vadd.f32 %v533_v7, %v532_v5  ;;  %v510_v10 = vrot.slane %v509_v8, 1  ;;  %v306_v7 = vstv %s987_s3 }
  0xc5   :  { %v535_v11 = vrot.slane %v534_v9, 1  ;;  %v511_v12 = vadd.f32 %v510_v10, %v509_v8 }
  0xc7   :  { %v536_v13 = vadd.f32 %v535_v11, %v534_v9  ;;  %652 = vpush %v511_v12  ;;  %v180_v11 = vstv %s989_s7 }
  0xc9   :  { %654 = vpush %v536_v13 }
  0xe4   :  { %s641_s23 = spop %640 }
  0xe5   :  { %v133_v14 = vstv %s641_s23 }
  0xe6   :  { %v969_v15 = vmul.f32 0.001953125, %v133_v14 }
  0xe8   :  { %v161_v17 = vmul.f32 %v969_v15, %v969_v15 }
  0xec   :  { %s643_s24 = spop %642 }
  0xed   :  { %v158_v16 = vstv %s643_s24  ;;  %s645_s25 = spop %644 }
  0xee   :  { %v160_v18 = vmul.f32 0.001953125, %v158_v16  ;;  %v263_v19 = vstv %s645_s25  ;;  %s647_s26 = spop %646 }
  0xef   :  { %v973_v20 = vmul.f32 0.001953125, %v263_v19  ;;  %v288_v21 = vstv %s647_s26  ;;  %s649_s27 = spop %648 }
  0xf0   :  { %v162_v24 = vsub.f32 %v160_v18, %v161_v17  ;;  %v388_v25 = vstv %s649_s27  ;;  %s651_s28 = spop %650  ;;  %v290_v27 = vmul.f32 0.001953125, %v288_v21  ;;  %v431_v17 = vstv %s991_s8 }
  0xf1   :  { %v291_v26 = vmul.f32 %v973_v20, %v973_v20  ;;  %v977_v28 = vmul.f32 0.001953125, %v388_v25  ;;  %v413_v29 = vstv %s651_s28  ;;  %v310_v25 = vstv %s993_s9 }
  0xf2   :  { %v163_v30 = vmax.f32 %v162_v24, 0.0  ;;  %v415_v31 = vmul.f32 0.001953125, %v413_v29 }
  0xf3   :  { %v292_v32 = vsub.f32 %v290_v27, %v291_v26  ;;  %v416_v33 = vmul.f32 %v977_v28, %v977_v28 }
  0xf4   :  { %v165_v34 = vadd.f32 1e-05, %v163_v30 }
  0xf5   :  { %v293_v35 = vmax.f32 %v292_v32, 0.0  ;;  %v417_v36 = vsub.f32 %v415_v31, %v416_v33 }
  0xf6   :  { %666 = vrsqrt.f32 %v165_v34  ;;  %vm172_vm3 = vweird.f32 %v165_v34 }
  0xf7   :  { %v295_v37 = vadd.f32 1e-05, %v293_v35  ;;  %v418_v38 = vmax.f32 %v417_v36, 0.0  ;;  %v435_v35 = vstv %s1000_s0 }
  0xf8   :  { %s653_s29 = spop %652 }
  0xf9   :  { %668 = vrsqrt.f32 %v295_v37  ;;  %v420_v39 = vadd.f32 1e-05, %v418_v38  ;;  %v513_v40 = vstv %s653_s29  ;;  %vm302_vm6 = vweird.f32 %v295_v37 }
  0xfa   :  { %s655_s30 = spop %654  ;;  %v981_v42 = vmul.f32 0.001953125, %v513_v40 }
  0xfb   :  { %670 = vrsqrt.f32 %v420_v39  ;;  %v538_v43 = vstv %s655_s30  ;;  %vm427_vm9 = vweird.f32 %v420_v39 }
  0xfc   :  { %v667_v41 = vpop.eup %666  ;;  %v541_v47 = vmul.f32 %v981_v42, %v981_v42  ;;  %v540_v48 = vmul.f32 0.001953125, %v538_v43 }
  0xfd   :  { %v167_v46 = vmul.f32 %v667_v41, %v165_v34  ;;  %vm173_vm2 = vweird.f32 %v667_v41 }
  0xfe   :  { %v542_v52 = vsub.f32 %v540_v48, %v541_v47  ;;  %vm174_vm4 = vmor %vm172_vm3, %vm173_vm2 }
  0xff   :  { %v669_v49 = vpop.eup %668  ;;  %v168_v50 = vmul.f32 %v667_v41, %v167_v46 }
 0x100   :  { %v297_v51 = vmul.f32 %v669_v49, %v295_v37  ;;  %v543_v59 = vmax.f32 %v542_v52, 0.0  ;;  %vm303_vm5 = vweird.f32 %v669_v49 }
 0x101   :  { %v671_v53 = vpop.eup %670  ;;  %v169_v0 = vmul.f32 0.5, %v168_v50  ;;  %vm304_vm7 = vmor %vm302_vm6, %vm303_vm5  ;;  %v212_v50 = vlaneseq }
 0x102   :  { %v298_v1 = vmul.f32 %v669_v49, %v297_v51  ;;  %v422_v58 = vmul.f32 %v671_v53, %v420_v39  ;;  %v995_v63 = vadd.f32 1e-05, %v543_v59  ;;  %vm428_vm8 = vweird.f32 %v671_v53 }
 0x103   :  { %v170_v60 = vsub.f32 1.5, %v169_v0  ;;  %vm429_vm10 = vmor %vm427_vm9, %vm428_vm8  ;;  %v560_v59 = vstv %s1018_s11  ;;  %vm1023_vm0 = vcmp.lt.s32.totalorder %v212_v50, 256 }
 0x104   :  { %v299_v61 = vmul.f32 0.5, %v298_v1  ;;  %v423_v62 = vmul.f32 %v671_v53, %v422_v58  ;;  %672 = vrsqrt.f32 %v995_v63  ;;  %vm552_vm12 = vweird.f32 %v995_v63 }
 0x105   :  { %v171_v2 = vmul.f32 %v667_v41, %v170_v60 }
 0x106   :  { %v300_v4 = vsub.f32 1.5, %v299_v61  ;;  %v424_v5 = vmul.f32 0.5, %v423_v62 }
 0x107   :  { %v175_v6 = vsel %vm174_vm4, %v667_v41, %v171_v2 }
 0x108   :  { %v177_v8 = vmul.f32 %v176_v3, %v175_v6  ;;  %v301_v9 = vmul.f32 %v669_v49, %v300_v4  ;;  %v425_v10 = vsub.f32 1.5, %v424_v5 }
 0x10a   :  { %v179_v12 = vmul.f32 %v177_v8, %v969_v15  ;;  %v305_v13 = vsel %vm304_vm7, %v669_v49, %v301_v9  ;;  %v426_v16 = vmul.f32 %v671_v53, %v425_v10  ;;  %v673_v18 = vpop.eup %672  ;;  %v182_v21 = vmul.f32 %v177_v8, %v890_v44 }
 0x10b   :  { %v307_v14 = vmul.f32 %v306_v7, %v305_v13  ;;  %v183_v24 = vmul.f32 %v177_v8, %v892_v45  ;;  %v547_v31 = vmul.f32 %v673_v18, %v995_v63  ;;  %vm553_vm11 = vweird.f32 %v673_v18 }
 0x10c   :  { %v181_v19 = vsub.f32 %v180_v11, %v179_v12  ;;  %v430_v27 = vsel %vm429_vm10, %v671_v53, %v426_v16  ;;  %vm554_vm13 = vmor %vm552_vm12, %vm553_vm11 }
 0x10d   :  { %v309_v26 = vmul.f32 %v307_v14, %v973_v20  ;;  %v432_v15 = vmul.f32 %v431_v17, %v430_v27  ;;  %v312_v33 = vmul.f32 %v307_v14, %v871_v22  ;;  %v313_v34 = vmul.f32 %v307_v14, %v873_v23 }
 0x10e   :  { %v184_v29 = vadd.f32 %v182_v21, %v181_v19  ;;  %v185_v30 = vadd.f32 %v183_v24, %v181_v19  ;;  %v548_v38 = vmul.f32 %v673_v18, %v547_v31 }
 0x10f   :  { %v311_v32 = vsub.f32 %v310_v25, %v309_v26  ;;  %v434_v36 = vmul.f32 %v432_v15, %v977_v28  ;;  %v437_v40 = vmul.f32 %v432_v15, %v900_v54  ;;  %v438_v41 = vmul.f32 %v432_v15, %v902_v55 }
 0x110   :  { %v186_v44 = vmul.f32 0.5, %v184_v29  ;;  %v187_v45 = vmul.f32 0.5, %v185_v30  ;;  %v549_v43 = vmul.f32 0.5, %v548_v38  ;;  %v556_v55 = vstv %s1013_s10 }
 0x111   :  { %v314_v37 = vadd.f32 %v312_v33, %v311_v32  ;;  %v315_v20 = vadd.f32 %v313_v34, %v311_v32  ;;  %v436_v39 = vsub.f32 %v435_v35, %v434_v36 }
 0x112   :  { %674 = vtanh.f32 %v186_v44  ;;  %v550_v28 = vsub.f32 1.5, %v549_v43 }
 0x113   :  { %676 = vtanh.f32 %v187_v45  ;;  %v316_v22 = vmul.f32 0.5, %v314_v37  ;;  %v317_v23 = vmul.f32 0.5, %v315_v20  ;;  %v439_v46 = vadd.f32 %v437_v40, %v436_v39 }
 0x114   :  { %v440_v47 = vadd.f32 %v438_v41, %v436_v39  ;;  %v551_v54 = vmul.f32 %v673_v18, %v550_v28 }
 0x115   :  { %678 = vtanh.f32 %v316_v22  ;;  %v441_v48 = vmul.f32 0.5, %v439_v46 }
 0x116   :  { %680 = vtanh.f32 %v317_v23  ;;  %v442_v49 = vmul.f32 0.5, %v440_v47  ;;  %v555_v0 = vsel %vm554_vm13, %v673_v18, %v551_v54 }
 0x117   :  { %682 = vtanh.f32 %v441_v48  ;;  %v557_v58 = vmul.f32 %v556_v55, %v555_v0 }
 0x118   :  { %v675_v51 = vpop.eup %674  ;;  %684 = vtanh.f32 %v442_v49 }
 0x119   :  { %v677_v52 = vpop.eup %676  ;;  %v190_v53 = vmul.f32 0.5, %v675_v51  ;;  %v559_v4 = vmul.f32 %v557_v58, %v981_v42  ;;  %v562_v5 = vmul.f32 %v557_v58, %v949_v56  ;;  %v563_v38 = vmul.f32 %v557_v58, %v951_v57 }
 0x11a   :  { %v191_v1 = vmul.f32 0.5, %v677_v52 }
 0x11b   :  { %v679_v60 = vpop.eup %678  ;;  %v192_v61 = vadd.f32 0.5, %v190_v53  ;;  %v561_v45 = vsub.f32 %v560_v59, %v559_v4 }
 0x11c   :  { %v681_v63 = vpop.eup %680  ;;  %v193_v2 = vadd.f32 0.5, %v191_v1  ;;  %v320_v3 = vmul.f32 0.5, %v679_v60 }
 0x11d   :  { %v196_v6 = vrot.slane %v192_v61, 1  ;;  %v197_v7 = vrot.slane %v192_v61, 2  ;;  %v198_v8 = vrot.slane %v192_v61, 3  ;;  %v321_v9 = vmul.f32 0.5, %v681_v63  ;;  %v683_v10 = vpop.eup %682 }
 0x11e   :  { %v199_v11 = vrot.slane %v193_v2, 1  ;;  %v200_v12 = vrot.slane %v193_v2, 2  ;;  %v201_v13 = vrot.slane %v193_v2, 3  ;;  %v322_v14 = vadd.f32 0.5, %v320_v3  ;;  %v685_v16 = vpop.eup %684 }
 0x11f   :  { %v203_v17 = vsel %vm202_vm14, %v192_v61, %v196_v6  ;;  %v205_v18 = vsel %vm204_vm15, %v197_v7, %v198_v8  ;;  %v323_v19 = vadd.f32 0.5, %v321_v9  ;;  %v445_v21 = vmul.f32 0.5, %v683_v10 }
 0x120   :  { %v206_v42 = vsel %vm120_vm1, %v203_v17, %v205_v18  ;;  %v207_v56 = vsel %vm202_vm14, %v193_v2, %v199_v11  ;;  %v208_v24 = vsel %vm204_vm15, %v200_v12, %v201_v13  ;;  %v326_v25 = vrot.slane %v322_v14, 1 }
 0x121   :  { %v209_v26 = vsel %vm120_vm1, %v207_v56, %v208_v24  ;;  %216 = vst.msk [vmem:[#allocation12] ss:$4 sm:$0x3] %vm1023_vm0, %v206_v42  ;;  %v327_v27 = vrot.slane %v322_v14, 2  ;;  %v328_v29 = vrot.slane %v322_v14, 3  ;;  %v329_v30 = vrot.slane %v323_v19, 1 }
 0x122   :  { %218 = vst.msk [vmem:[#allocation12 + $0x8] ss:$4 sm:$0x3] %vm1023_vm0, %v209_v26  ;;  %v330_v15 = vrot.slane %v323_v19, 2  ;;  %v331_v31 = vrot.slane %v323_v19, 3  ;;  %v332_v32 = vsel %vm202_vm14, %v322_v14, %v326_v25  ;;  %v446_v33 = vmul.f32 0.5, %v685_v16 }
 0x123   :  { %v333_v34 = vsel %vm204_vm15, %v327_v27, %v328_v29  ;;  %v335_v35 = vsel %vm202_vm14, %v323_v19, %v329_v30  ;;  %v447_v44 = vadd.f32 0.5, %v445_v21  ;;  %v564_v47 = vadd.f32 %v562_v5, %v561_v45 }
 0x124   :  { %v334_v36 = vsel %vm120_vm1, %v332_v32, %v333_v34  ;;  %v336_v37 = vsel %vm204_vm15, %v330_v15, %v331_v31  ;;  %v448_v20 = vadd.f32 0.5, %v446_v33  ;;  %v565_v57 = vadd.f32 %v563_v38, %v561_v45 }
 0x125   :  { %v337_v39 = vsel %vm120_vm1, %v335_v35, %v336_v37  ;;  %341 = vst.msk [vmem:[#allocation12 + $0x1] ss:$4 sm:$0x3] %vm1023_vm0, %v334_v36  ;;  %v451_v40 = vrot.slane %v447_v44, 1  ;;  %v452_v41 = vrot.slane %v447_v44, 2  ;;  %v453_v22 = vrot.slane %v447_v44, 3 }
 0x126   :  { %343 = vst.msk [vmem:[#allocation12 + $0x9] ss:$4 sm:$0x3] %vm1023_vm0, %v337_v39  ;;  %v454_v23 = vrot.slane %v448_v20, 1  ;;  %v455_v43 = vrot.slane %v448_v20, 2  ;;  %v456_v46 = vrot.slane %v448_v20, 3 }
 0x127   :  { %v457_v28 = vsel %vm202_vm14, %v447_v44, %v451_v40  ;;  %v458_v48 = vsel %vm204_vm15, %v452_v41, %v453_v22  ;;  %v566_v55 = vmul.f32 0.5, %v564_v47  ;;  %v567_v52 = vmul.f32 0.5, %v565_v57 }
 0x128   :  { %v459_v49 = vsel %vm120_vm1, %v457_v28, %v458_v48  ;;  %v460_v50 = vsel %vm202_vm14, %v448_v20, %v454_v23  ;;  %v461_v54 = vsel %vm204_vm15, %v455_v43, %v456_v46 }
 0x129   :  { %v462_v51 = vsel %vm120_vm1, %v460_v50, %v461_v54  ;;  %466 = vst.msk [vmem:[#allocation12 + $0x2] ss:$4 sm:$0x3] %vm1023_vm0, %v459_v49  ;;  %686 = vtanh.f32 %v566_v55 }
 0x12a   :  { %468 = vst.msk [vmem:[#allocation12 + $0xa] ss:$4 sm:$0x3] %vm1023_vm0, %v462_v51  ;;  %688 = vtanh.f32 %v567_v52 }
 0x12f   :  { %v687_v53 = vpop.eup %686 }
 0x130   :  { %v689_v0 = vpop.eup %688  ;;  %v570_v1 = vmul.f32 0.5, %v687_v53 }
 0x131   :  { %v571_v58 = vmul.f32 0.5, %v689_v0 }
 0x132   :  { %v572_v59 = vadd.f32 0.5, %v570_v1 }
 0x133   :  { %v573_v60 = vadd.f32 0.5, %v571_v58 }
 0x134   :  { %v576_v61 = vrot.slane %v572_v59, 1  ;;  %v577_v63 = vrot.slane %v572_v59, 2  ;;  %v578_v2 = vrot.slane %v572_v59, 3 }
 0x135   :  { %v579_v3 = vrot.slane %v573_v60, 1  ;;  %v580_v4 = vrot.slane %v573_v60, 2  ;;  %v581_v5 = vrot.slane %v573_v60, 3 }
 0x136   :  { %v582_v6 = vsel %vm202_vm14, %v572_v59, %v576_v61  ;;  %v583_v7 = vsel %vm204_vm15, %v577_v63, %v578_v2 }
 0x137   :  { %v584_v8 = vsel %vm120_vm1, %v582_v6, %v583_v7  ;;  %v585_v9 = vsel %vm202_vm14, %v573_v60, %v579_v3  ;;  %v586_v10 = vsel %vm204_vm15, %v580_v4, %v581_v5 }
 0x138   :  { %v587_v11 = vsel %vm120_vm1, %v585_v9, %v586_v10  ;;  %591 = vst.msk [vmem:[#allocation12 + $0x3] ss:$4 sm:$0x3] %vm1023_vm0, %v584_v8 }
 0x139   :  { %593 = vst.msk [vmem:[#allocation12 + $0xb] ss:$4 sm:$0x3] %vm1023_vm0, %v587_v11 }
 0x13a   :  { %606 = dma.vmem_to_hbm [thread:$0]  %s599_s13, 256, %s601_s14, [#allocation4], %s804_s5, %s804_s5, %s805_s15  }
 0x13b   :  { %794 = dma.done.wait [#allocation4], 256  }
 0x13c   :  { %795 = vsyncadd [#allocation4], 4294967040 }
 0x13d   :  { %611 = vsyncpa [#allocation3], 1 }
 0x13e   :  { %612 = vsyncpa [#allocation4], 1 }
 0x13f   :  { %613 = vsyncpa [#allocation5], 1 }
 0x140   :  { %614 = vsyncpa [#allocation6], 1 }
 0x141   :  { %615 = vsyncpa [#allocation10], 1 }

</bundles_post_ra>
